<compile_context>
chip_gen: v7x
topology: tpu7x:2x2x1
jax: 0.10.0
libtpu: 0.0.40
codegen_flags: <defaults>
</compile_context>

<pallas_src>
import functools

import jax
import jax.numpy as jnp
from jax.experimental import pallas as pl
from jax.experimental.pallas import tpu as pltpu


# ---------------------------------------------------------------------------
# Fused single-call kernel: whole (NB, C, HW) / (NB, Cin, HW) tiles per step.
# ---------------------------------------------------------------------------
def _agroupnorm_fused_kernel(x_ref, y_ref, w_ref, b_ref, o_ref, *,
                             num_groups, eps, affine_dtype):
    NB, C, HW = x_ref.shape
    G = num_groups
    Cg = C // G

    # ---- group-norm statistics: per-channel lane reductions ----------------
    # f32 cast is fused into this phase only; x_ref is re-read for the final
    # affine so no full-tile f32 temporary stays live across the conv matmul.
    xf = x_ref[...].astype(jnp.float32)                     # (NB, C, HW)
    s = jnp.sum(xf, axis=-1, keepdims=True)                 # (NB, C, 1)
    sq = jnp.sum(xf * xf, axis=-1, keepdims=True)           # (NB, C, 1)
    # TODO(synk): fuse sum/sumsq into one chunked lane sweep if VALU/vld ever
    # becomes the binding slot on v7x (kernel stays HBM-bound at these tiles).

    # Tiny per-group reduce on the (NB, C, 1) vectors only.
    gs = jnp.sum(s.reshape(NB, G, Cg), axis=-1, keepdims=True)    # (NB, G, 1)
    gsq = jnp.sum(sq.reshape(NB, G, Cg), axis=-1, keepdims=True)  # (NB, G, 1)

    n = Cg * HW                                   # true element count per group
    mean_g = gs * (1.0 / n)
    # torch.var default is UNBIASED (ddof=1), matching `x.var(-1)` in the module
    var_g = (gsq - gs * mean_g) * (1.0 / max(n - 1, 1))
    rstd_g = jax.lax.rsqrt(var_g + eps)                     # (NB, G, 1)
    mean_c = jnp.repeat(mean_g, Cg, axis=1)                 # (NB, C, 1)
    rstd_c = jnp.repeat(rstd_g, Cg, axis=1)                 # (NB, C, 1)

    # ---- adaptive_avg_pool2d(y, 1) + fused conv1|conv2 (1x1 conv == matvec)
    pool = jnp.sum(y_ref[...].astype(jnp.float32), axis=-1) * (1.0 / HW)  # (NB, Cin)
    wb = jnp.dot(pool, w_ref[...],
                 preferred_element_type=jnp.float32) + b_ref[...]         # (NB, 2C)
    weight = wb[:, :C][:, :, None]                          # (NB, C, 1)
    bias = wb[:, C:][:, :, None]                            # (NB, C, 1)

    # ---- single fused per-channel affine pass over the big tile ------------
    scale_f = rstd_c * weight                               # (NB, C, 1)
    shift_f = bias - mean_c * scale_f
    scale = scale_f.astype(affine_dtype)
    shift = shift_f.astype(affine_dtype)
    o_ref[...] = (x_ref[...].astype(affine_dtype) * scale + shift).astype(o_ref.dtype)


# ---------------------------------------------------------------------------
# HW-tiled two-pass fallback for samples too large for a single-step block.
# ---------------------------------------------------------------------------
def _agroupnorm_stats_kernel(x_ref, y_ref, s_ref, q_ref, p_ref, *, hw, hw_chunk):
    c = pl.program_id(1)

    @pl.when(c == 0)
    def _():
        s_ref[...] = jnp.zeros_like(s_ref)
        q_ref[...] = jnp.zeros_like(q_ref)
        p_ref[...] = jnp.zeros_like(p_ref)

    # Mask lanes past the true spatial extent (ragged last chunk).
    lane = jax.lax.broadcasted_iota(jnp.int32, (1, 1, hw_chunk), 2)
    valid = (c * hw_chunk + lane) < hw                      # (1, 1, HWc)

    xf = jnp.where(valid, x_ref[...].astype(jnp.float32), 0.0)   # (1, C, HWc)
    s_ref[...] += jnp.sum(xf, axis=-1, keepdims=True)
    q_ref[...] += jnp.sum(xf * xf, axis=-1, keepdims=True)

    yf = jnp.where(valid, y_ref[...].astype(jnp.float32), 0.0)   # (1, Cin, HWc)
    p_ref[...] += jnp.sum(yf, axis=-1, keepdims=True)


def _agroupnorm_apply_kernel(x_ref, scale_ref, shift_ref, o_ref, *, affine_dtype):
    scale = scale_ref[...].astype(affine_dtype)             # (1, C, 1)
    shift = shift_ref[...].astype(affine_dtype)
    o_ref[...] = (x_ref[...].astype(affine_dtype) * scale + shift).astype(o_ref.dtype)


def _agroupnorm_hw_tiled(x2, y2, w12t, b12, *, num_groups, eps, step_cap,
                         vmem_max, affine_dtype):
    """Two-pass path: HW-chunked stats accumulation, tiny host-side reduce +
    conv matvec, then an HW-chunked apply pass."""
    N, C, HW = x2.shape
    Cin = y2.shape[1]
    G = num_groups
    Cg = C // G
    itemx = jnp.dtype(x2.dtype).itemsize
    itemy = jnp.dtype(y2.dtype).itemsize

    bytes_per_lane = 2 * C * itemx + Cin * itemy            # x + out + y per lane
    hw_chunk = max(128, (step_cap // max(bytes_per_lane, 1)) // 128 * 128)
    hw_chunk = min(hw_chunk, ((HW + 127) // 128) * 128)
    n_chunks = pl.cdiv(HW, hw_chunk)

    stats_kernel = functools.partial(_agroupnorm_stats_kernel,
                                     hw=HW, hw_chunk=hw_chunk)
    s, q, p = pl.pallas_call(
        stats_kernel,
        out_shape=(jax.ShapeDtypeStruct((N, C, 1), jnp.float32),
                   jax.ShapeDtypeStruct((N, C, 1), jnp.float32),
                   jax.ShapeDtypeStruct((N, Cin, 1), jnp.float32)),
        grid_spec=pltpu.PrefetchScalarGridSpec(
            num_scalar_prefetch=0,
            grid=(N, n_chunks),
            in_specs=[
                pl.BlockSpec((1, C, hw_chunk), lambda n, c: (n, 0, c)),
                pl.BlockSpec((1, Cin, hw_chunk), lambda n, c: (n, 0, c)),
            ],
            out_specs=[
                pl.BlockSpec((1, C, 1), lambda n, c: (n, 0, 0)),
                pl.BlockSpec((1, C, 1), lambda n, c: (n, 0, 0)),
                pl.BlockSpec((1, Cin, 1), lambda n, c: (n, 0, 0)),
            ],
        ),
        compiler_params=pltpu.CompilerParams(
            dimension_semantics=("parallel", "arbitrary"),
            vmem_limit_bytes=int(vmem_max)),
    )(x2, y2)

    # Tiny O(N*C) reduction + fused conv1|conv2 matvec in plain JAX.
    n_el = Cg * HW
    gs = s[:, :, 0].reshape(N, G, Cg).sum(-1)               # (N, G)
    gq = q[:, :, 0].reshape(N, G, Cg).sum(-1)
    mean_g = gs / n_el
    var_g = (gq - gs * mean_g) / max(n_el - 1, 1)           # unbiased (ddof=1)
    rstd_g = jax.lax.rsqrt(var_g + eps)
    mean_c = jnp.repeat(mean_g, Cg, axis=1)                 # (N, C)
    rstd_c = jnp.repeat(rstd_g, Cg, axis=1)
    pool = p[:, :, 0] / HW                                  # (N, Cin)
    wb = pool @ w12t + b12                                  # (N, 2C)
    weight, bias = wb[:, :C], wb[:, C:]
    scale = (rstd_c * weight)[:, :, None].astype(jnp.float32)      # (N, C, 1)
    shift = (bias - mean_c * rstd_c * weight)[:, :, None].astype(jnp.float32)

    apply_kernel = functools.partial(_agroupnorm_apply_kernel,
                                     affine_dtype=affine_dtype)
    out = pl.pallas_call(
        apply_kernel,
        out_shape=jax.ShapeDtypeStruct((N, C, HW), x2.dtype),
        grid_spec=pltpu.PrefetchScalarGridSpec(
            num_scalar_prefetch=0,
            grid=(N, n_chunks),
            in_specs=[
                pl.BlockSpec((1, C, hw_chunk), lambda n, c: (n, 0, c)),
                pl.BlockSpec((1, C, 1), lambda n, c: (n, 0, 0)),
                pl.BlockSpec((1, C, 1), lambda n, c: (n, 0, 0)),
            ],
            out_specs=pl.BlockSpec((1, C, hw_chunk), lambda n, c: (n, 0, c)),
        ),
        compiler_params=pltpu.CompilerParams(
            dimension_semantics=("parallel", "parallel"),
            vmem_limit_bytes=int(vmem_max)),
    )(x2, scale, shift)
    return out


# ---------------------------------------------------------------------------
# Wrapper
# ---------------------------------------------------------------------------
def _vmem_budget():
    """(per-step I/O cap, max vmem_limit_bytes), keyed on this chip's VMEM."""
    vmem_cap = None
    try:
        info = pltpu.get_tpu_info()
        vmem_cap = getattr(info, "vmem_capacity_bytes", None)
    except Exception:
        vmem_cap = None
    if vmem_cap is None or vmem_cap <= (64 << 20):   # v7x-class: 64 MiB / TC
        return 7 << 20, 40 << 20
    return 20 << 20, 80 << 20                        # v5e/v6e-class: 128 MiB


def _pick_block_batch(N, per_sample_bytes, step_cap_bytes):
    """Largest per-step batch that fits the per-step cap while keeping the
    grid length >= 2 (pipelining + v7x's second TensorCore).  Prefers an exact
    divisor of N; otherwise uses a ragged last block (grid via pl.cdiv)."""
    if N <= 1:
        return 1
    max_nb = max(1, min((N + 1) // 2, step_cap_bytes // max(per_sample_bytes, 1)))
    best_div = 1
    for d in range(1, max_nb + 1):
        if N % d == 0:
            best_div = d
    if 2 * best_div >= max_nb:
        return best_div            # exact tiling is close enough to the cap
    return max_nb                  # ragged last block (per-sample math is safe)


def agroupnorm(x, y, w1, b1, w2, b2, *, num_groups, eps=1e-5,
               max_step_io_bytes=None):
    """x, y: NCHW.  w1/w2: (Cout, Cin) 1x1-conv weights.  b1/b2: (Cout,)."""
    N, C, H, W = x.shape
    HW = H * W
    Cin = y.shape[1]
    Cout = w1.shape[0]
    assert C % num_groups == 0
    assert Cout == C   # required by the module's broadcast `x * weight + bias`
    assert y.shape[0] == N and y.shape[2] == H and y.shape[3] == W

    # No spatial padding: blocks carry the full, unpadded HW as their last dim,
    # so no extra HBM pad/slice passes are wrapped around the kernel.
    x2 = x.reshape(N, C, HW)
    y2 = y.reshape(N, Cin, HW)

    # conv1 | conv2 merged into a single (Cin, 2*Cout) matmul operand.
    w12t = jnp.concatenate([w1, w2], axis=0).T.astype(jnp.float32)    # (Cin, 2C)
    b12 = jnp.concatenate([b1, b2]).reshape(1, 2 * Cout).astype(jnp.float32)

    itemx = jnp.dtype(x.dtype).itemsize
    itemy = jnp.dtype(y.dtype).itemsize
    per_sample_io = (2 * C * itemx + Cin * itemy) * HW      # x + out + y / sample
    per_sample_work = (C + Cin) * HW * 4                    # in-kernel f32 working set

    step_cap, vmem_max = _vmem_budget()
    if max_step_io_bytes is not None:
        step_cap = int(max_step_io_bytes)

    # bf16 in/out -> do the big affine pass in bf16 (2x VALU rate on v6e/v7x);
    # statistics stay in f32.  (On v5e this is emulated but still correct.)
    affine_dtype = (x.dtype if jnp.dtype(x.dtype) == jnp.dtype(jnp.bfloat16)
                    else jnp.float32)

    if per_sample_io > step_cap:
        # One sample alone exceeds the per-step budget -> HW-tiled two-pass path.
        out = _agroupnorm_hw_tiled(x2, y2, w12t, b12, num_groups=num_groups,
                                   eps=eps, step_cap=step_cap, vmem_max=vmem_max,
                                   affine_dtype=affine_dtype)
        return out.reshape(N, C, H, W)

    NB = _pick_block_batch(N, per_sample_io, step_cap)
    grid = (pl.cdiv(N, NB),)

    weights_bytes = (Cin * 2 * Cout + 2 * Cout) * 4
    need = (2 * NB * per_sample_io + NB * per_sample_work
            + 2 * weights_bytes + (2 << 20))
    vmem_limit = int(min(max(need + need // 4, 32 << 20), vmem_max))

    kernel = functools.partial(_agroupnorm_fused_kernel, num_groups=num_groups,
                               eps=eps, affine_dtype=affine_dtype)
    out = pl.pallas_call(
        kernel,
        out_shape=jax.ShapeDtypeStruct((N, C, HW), x.dtype),
        grid_spec=pltpu.PrefetchScalarGridSpec(
            num_scalar_prefetch=0,
            grid=grid,
            in_specs=[
                pl.BlockSpec((NB, C, HW), lambda n: (n, 0, 0)),
                pl.BlockSpec((NB, Cin, HW), lambda n: (n, 0, 0)),
                pl.BlockSpec((Cin, 2 * Cout), lambda n: (0, 0)),
                pl.BlockSpec((1, 2 * Cout), lambda n: (0, 0)),
            ],
            out_specs=pl.BlockSpec((NB, C, HW), lambda n: (n, 0, 0)),
        ),
        compiler_params=pltpu.CompilerParams(
            dimension_semantics=("parallel",),
            vmem_limit_bytes=vmem_limit),
    )(x2, y2, w12t, b12)
    return out.reshape(N, C, H, W)


def agroupnorm_reference(x, y, w1, b1, w2, b2, *, num_groups, eps=1e-5):
    """Plain-JAX reference mirroring the PyTorch forward."""
    N, C, H, W = x.shape
    G = num_groups
    xg = x.reshape(N, G, -1)
    mean = xg.mean(-1, keepdims=True)
    var = xg.var(-1, keepdims=True, ddof=1)          # torch.var default: unbiased
    xn = ((xg - mean) / jnp.sqrt(var + eps)).reshape(N, C, H, W)
    pool = y.mean(axis=(2, 3))                       # (N, Cin)
    weight = pool @ w1.T + b1                        # (N, Cout)
    bias = pool @ w2.T + b2
    return xn * weight[:, :, None, None] + bias[:, :, None, None]


if __name__ == "__main__":
    num_groups = 4
    eps = 1e-5

    def run_case(case_key, N, C, H, W, **kw):
        kx, ky, kw1, kb1, kw2, kb2 = jax.random.split(case_key, 6)
        x = jax.random.normal(kx, (N, C, H, W), dtype=jnp.float32)
        y = jax.random.normal(ky, (N, C, H, W), dtype=jnp.float32)
        # Deterministic synthetic conv1/conv2 params (1x1 convs -> dense weights).
        w1 = jax.random.normal(kw1, (C, C), dtype=jnp.float32) * 0.1
        b1 = jax.random.normal(kb1, (C,), dtype=jnp.float32) * 0.1
        w2 = jax.random.normal(kw2, (C, C), dtype=jnp.float32) * 0.1
        b2 = jax.random.normal(kb2, (C,), dtype=jnp.float32) * 0.1
        out = jax.block_until_ready(
            agroupnorm(x, y, w1, b1, w2, b2, num_groups=num_groups, eps=eps, **kw))
        ref = agroupnorm_reference(x, y, w1, b1, w2, b2,
                                   num_groups=num_groups, eps=eps)
        assert out.shape == (N, C, H, W)
        assert jnp.allclose(out, ref, rtol=1e-4, atol=1e-4), "mismatch vs reference"

    key = jax.random.PRNGKey(0)
    k1, k2, k3 = jax.random.split(key, 3)
    # Fused path, lane-dense HW (multiple of 128), grid length 2.
    run_case(k1, N=2, C=32, H=16, W=16)
    # Fused path, HW not a multiple of 128 (unpadded full-HW blocks), NB=2.
    run_case(k2, N=4, C=32, H=15, W=15)
    # Forced HW-tiled two-pass fallback (oversized-sample path) via tiny cap.
    run_case(k3, N=2, C=32, H=16, W=16, max_step_io_bytes=64 * 1024)
    print("KERNEL_OK")
</pallas_src>

<mosaic_0001>
module attributes {stable_mosaic.version = 11 : i64} {
  func.func @_agroupnorm_fused_kernel(%arg0: i32, %arg1: memref<1x32x256xf32, #tpu.memory_space<vmem>>, %arg2: memref<1x32x256xf32, #tpu.memory_space<vmem>>, %arg3: memref<32x64xf32, #tpu.memory_space<vmem>>, %arg4: memref<1x64xf32, #tpu.memory_space<vmem>>, %arg5: memref<1x32x256xf32, #tpu.memory_space<vmem>>) attributes {dimension_semantics = [#tpu.dimension_semantics<parallel>], iteration_bounds = array<i64: 2>, scalar_prefetch = 0 : i64, scratch_operands = 0 : i64, tpu.core_type = #tpu.core_type<tc>, window_params = [{transform_indices = @transform_0, window_bounds = array<i64: 1, 32, 256>}, {transform_indices = @transform_1, window_bounds = array<i64: 1, 32, 256>}, {pipeline_mode = #tpu.pipeline_mode<synchronous>, transform_indices = @transform_2, window_bounds = array<i64: 32, 64>}, {pipeline_mode = #tpu.pipeline_mode<synchronous>, transform_indices = @transform_3, window_bounds = array<i64: 1, 64>}, {transform_indices = @transform_4, window_bounds = array<i64: 1, 32, 256>}]} {
    %c0 = arith.constant 0 : index
    %c0_0 = arith.constant 0 : index
    %c0_1 = arith.constant 0 : index
    %0 = vector.load %arg1[%c0, %c0_0, %c0_1] : memref<1x32x256xf32, #tpu.memory_space<vmem>>, vector<1x32x256xf32>
    %cst = arith.constant dense<0.000000e+00> : vector<1x32xf32>
    %1 = vector.multi_reduction <add>, %0, %cst [2] : vector<1x32x256xf32> to vector<1x32xf32>
    %2 = vector.shape_cast %1 : vector<1x32xf32> to vector<1x32x1xf32>
    %3 = arith.mulf %0, %0 : vector<1x32x256xf32>
    %cst_2 = arith.constant dense<0.000000e+00> : vector<1x32xf32>
    %4 = vector.multi_reduction <add>, %3, %cst_2 [2] : vector<1x32x256xf32> to vector<1x32xf32>
    %5 = vector.shape_cast %4 : vector<1x32xf32> to vector<1x32x1xf32>
    %6 = vector.shape_cast %2 : vector<1x32x1xf32> to vector<1x4x8xf32>
    %cst_3 = arith.constant dense<0.000000e+00> : vector<1x4xf32>
    %7 = vector.multi_reduction <add>, %6, %cst_3 [2] : vector<1x4x8xf32> to vector<1x4xf32>
    %8 = vector.shape_cast %7 : vector<1x4xf32> to vector<1x4x1xf32>
    %9 = vector.shape_cast %5 : vector<1x32x1xf32> to vector<1x4x8xf32>
    %cst_4 = arith.constant dense<0.000000e+00> : vector<1x4xf32>
    %10 = vector.multi_reduction <add>, %9, %cst_4 [2] : vector<1x4x8xf32> to vector<1x4xf32>
    %11 = vector.shape_cast %10 : vector<1x4xf32> to vector<1x4x1xf32>
    %cst_5 = arith.constant 4.8828125E-4 : f32
    %12 = vector.broadcast %cst_5 : f32 to vector<1x4x1xf32>
    %13 = arith.mulf %8, %12 : vector<1x4x1xf32>
    %14 = arith.mulf %8, %13 : vector<1x4x1xf32>
    %15 = arith.subf %11, %14 : vector<1x4x1xf32>
    %cst_6 = arith.constant 4.88519785E-4 : f32
    %16 = vector.broadcast %cst_6 : f32 to vector<1x4x1xf32>
    %17 = arith.mulf %15, %16 : vector<1x4x1xf32>
    %cst_7 = arith.constant 9.99999974E-6 : f32
    %18 = vector.broadcast %cst_7 : f32 to vector<1x4x1xf32>
    %19 = arith.addf %17, %18 : vector<1x4x1xf32>
    %20 = math.rsqrt %19 : vector<1x4x1xf32>
    %21 = vector.shape_cast %13 : vector<1x4x1xf32> to vector<1x4x1x1xf32>
    %22 = vector.broadcast %21 : vector<1x4x1x1xf32> to vector<1x4x8x1xf32>
    %23 = vector.shape_cast %22 : vector<1x4x8x1xf32> to vector<1x32x1xf32>
    %24 = vector.shape_cast %20 : vector<1x4x1xf32> to vector<1x4x1x1xf32>
    %25 = vector.broadcast %24 : vector<1x4x1x1xf32> to vector<1x4x8x1xf32>
    %26 = vector.shape_cast %25 : vector<1x4x8x1xf32> to vector<1x32x1xf32>
    %c0_8 = arith.constant 0 : index
    %c0_9 = arith.constant 0 : index
    %c0_10 = arith.constant 0 : index
    %27 = vector.load %arg2[%c0_8, %c0_9, %c0_10] : memref<1x32x256xf32, #tpu.memory_space<vmem>>, vector<1x32x256xf32>
    %cst_11 = arith.constant dense<0.000000e+00> : vector<1x32xf32>
    %28 = vector.multi_reduction <add>, %27, %cst_11 [2] : vector<1x32x256xf32> to vector<1x32xf32>
    %cst_12 = arith.constant 3.906250e-03 : f32
    %29 = vector.broadcast %cst_12 : f32 to vector<1x32xf32>
    %30 = arith.mulf %28, %29 : vector<1x32xf32>
    %c0_13 = arith.constant 0 : index
    %c0_14 = arith.constant 0 : index
    %31 = vector.load %arg3[%c0_13, %c0_14] : memref<32x64xf32, #tpu.memory_space<vmem>>, vector<32x64xf32>
    %cst_15 = arith.constant dense<0.000000e+00> : vector<1x64xf32>
    %32 = tpu.matmul %30, %31, %cst_15 {dimension_numbers = #tpu.dot_dimension_numbers<[1], [0], [0], [1], [0, 0, 1, 1], [], []>} : vector<1x32xf32>, vector<32x64xf32>, vector<1x64xf32> -> vector<1x64xf32>
    %c0_16 = arith.constant 0 : index
    %c0_17 = arith.constant 0 : index
    %33 = vector.load %arg4[%c0_16, %c0_17] : memref<1x64xf32, #tpu.memory_space<vmem>>, vector<1x64xf32>
    %34 = arith.addf %32, %33 : vector<1x64xf32>
    %35 = vector.extract_strided_slice %34 {offsets = [0, 0], sizes = [1, 32], strides = [1, 1]} : vector<1x64xf32> to vector<1x32xf32>
    %36 = vector.shape_cast %35 : vector<1x32xf32> to vector<1x32x1xf32>
    %37 = vector.extract_strided_slice %34 {offsets = [0, 32], sizes = [1, 32], strides = [1, 1]} : vector<1x64xf32> to vector<1x32xf32>
    %38 = vector.shape_cast %37 : vector<1x32xf32> to vector<1x32x1xf32>
    %39 = arith.mulf %26, %36 : vector<1x32x1xf32>
    %40 = arith.mulf %23, %39 : vector<1x32x1xf32>
    %41 = arith.subf %38, %40 : vector<1x32x1xf32>
    %c0_18 = arith.constant 0 : index
    %c0_19 = arith.constant 0 : index
    %c0_20 = arith.constant 0 : index
    %42 = vector.load %arg1[%c0_18, %c0_19, %c0_20] : memref<1x32x256xf32, #tpu.memory_space<vmem>>, vector<1x32x256xf32>
    %43 = vector.broadcast %39 : vector<1x32x1xf32> to vector<1x32x256xf32>
    %44 = arith.mulf %42, %43 : vector<1x32x256xf32>
    %45 = vector.broadcast %41 : vector<1x32x1xf32> to vector<1x32x256xf32>
    %46 = arith.addf %44, %45 : vector<1x32x256xf32>
    %c0_21 = arith.constant 0 : index
    %c0_22 = arith.constant 0 : index
    %c0_23 = arith.constant 0 : index
    %47 = vector.load %arg5[%c0_21, %c0_22, %c0_23] : memref<1x32x256xf32, #tpu.memory_space<vmem>>, vector<1x32x256xf32>
    tpu.vector_store %arg5[%c0_21, %c0_22, %c0_23], %46 {strides = array<i32>} : memref<1x32x256xf32, #tpu.memory_space<vmem>>, vector<1x32x256xf32>,
    return
  }
  func.func @transform_0(%arg0: i32) -> (i32, i32, i32) {
    %c0_i32 = arith.constant 0 : i32
    %c0_i32_0 = arith.constant 0 : i32
    %c0_i32_1 = arith.constant 0 : i32
    return %arg0, %c0_i32, %c0_i32_0 : i32, i32, i32
  }
  func.func @transform_1(%arg0: i32) -> (i32, i32, i32) {
    %c0_i32 = arith.constant 0 : i32
    %c0_i32_0 = arith.constant 0 : i32
    %c0_i32_1 = arith.constant 0 : i32
    return %arg0, %c0_i32, %c0_i32_0 : i32, i32, i32
  }
  func.func @transform_2(%arg0: i32) -> (i32, i32) {
    %c0_i32 = arith.constant 0 : i32
    %c0_i32_0 = arith.constant 0 : i32
    %c0_i32_1 = arith.constant 0 : i32
    return %c0_i32, %c0_i32_0 : i32, i32
  }
  func.func @transform_3(%arg0: i32) -> (i32, i32) {
    %c0_i32 = arith.constant 0 : i32
    %c0_i32_0 = arith.constant 0 : i32
    %c0_i32_1 = arith.constant 0 : i32
    return %c0_i32, %c0_i32_0 : i32, i32
  }
  func.func @transform_4(%arg0: i32) -> (i32, i32, i32) {
    %c0_i32 = arith.constant 0 : i32
    %c0_i32_0 = arith.constant 0 : i32
    %c0_i32_1 = arith.constant 0 : i32
    return %arg0, %c0_i32, %c0_i32_0 : i32, i32, i32
  }
}

</mosaic_0001>

<bundles_post_ra>
// kernel: tpu_custom_call.1
= control target key start
LH: loop header
LB: loop body
LE: loop exit
PB: predicated region body
PF: predicated region fallthrough
CT: control target
= control target key end

     0   :  { %s1482_s0 = inlined_call_operand.hbm [shape: f32[2,32,256], index: 0, kind: input, shape index: {}]   ;;  %s1483_s1 = inlined_call_operand.hbm [shape: f32[2,32,256], index: 1, kind: input, shape index: {}]   ;;  %s1484_s2 = inlined_call_operand.hbm [shape: f32[32,64], index: 2, kind: input, shape index: {}]   ;;  %s1485_s3 = inlined_call_operand.vmem [shape: f32[1,64], index: 3, kind: input, shape index: {}]   ;;  %s1486_s4 = inlined_call_operand.hbm [shape: f32[2,32,256], index: 4, kind: output, shape index: {}]  }
   0x1   :  { %1490 = sst [smem:[#allocation13_spill]] %s1482_s0 }
   0x2   :  { %9 = vsyncpa [#allocation3], 0 }
   0x3   :  { %11 = vsyncpa [#allocation3 + $0x1], 0 }
   0x4   :  { %12 = vsyncpa [#allocation6], 0 }
   0x5   :  { %14 = vsyncpa [#allocation6 + $0x1], 0 }
   0x6   :  { %15 = vsyncpa [#allocation4], 0 }
   0x7   :  { %17 = vsyncpa [#allocation4 + $0x1], 0  ;;  %s1137_s15 = smov 0   ;;  %s1139_s16 = smov 0  }
   0x8   :  { %s1141_s17 = smov 0   ;;  %s1143_s18 = smov 0  }
   0x9 LB: > { %s1158_s19 = sadd.s32 4294967295, %s1094_s18   ;;  %s808_s20 = sadd.s32 4294967294, %s1094_s18   ;;  %s1094_s18 = sphi %s1143_s18, %s1508_s18   ;;  %s1090_s17 = sphi %s1141_s17, %s1507_s17   ;;  %s1086_s16 = sphi %s1139_s16, %s1506_s16   ;;  %s1082_s15 = sphi %s1137_s15, %s1505_s15  }
   0xa   : > { %p43_p0 = scmp.ne.s32.totalorder %s1086_s16, %s1082_s15  ;;  %p1487_p1 = scmp.eq.s32.totalorder %s1158_s19, 0 }
   0xb   : > { %p141_p3 = scmp.eq.s32.totalorder %s808_s20, 1  ;;  %p809_p5 = scmp.ge.s32.totalorder %s1094_s18, 1 }
   0xc   : > { %p1167_p4 = por %p1487_p1, %p43_p0  ;;  %p148_p7 = scmp.lt.s32.totalorder %s1094_s18, 3 }
   0xd   : > { %p1172_p6 = por %p141_p3, %p43_p0  ;;  %s1096_s24 = smov [#allocation7]  }
   0xe   : > { %s1491_s21 = scalar_select %p1167_p4, 1, 0 }
   0xf   : > { %s1492_s22 = scalar_select %p1172_p6, 1, 0 }
  0x10   : > { %p1177_p8 = pnand %p809_p5, %p148_p7  ;;  %s160_s25 = sshll.u32 %s1096_s24, 4  ;;  %s1181_s25 = int_to_ptr.vmem [resolvable:$true] %s160_s25 }
  0x11   : > { %s1193_s27 = sadd.s32 1, %s1094_s18   ;;  %s30_s28 = sadd.s32 1, %s1090_s17 }
  0x12   : > { %s1493_s23 = scalar_select %p1177_p8, 1, 0 }
  0x13   : > { %p864_p9 = pneg %p1177_p8  ;;  %s27_s29 = ssub.s32 %s1094_s18, %s1193_s27 }
  0x14   : > { %s932_s6 = scalar_lea.hbm %s1484_s2, 512 }
  0x15   : > { %p1188_p11 = pnand %p864_p9, %p1487_p1  ;;  %p933_p12 = scmp.ne.s32.totalorder %s1484_s2, %s932_s6 }
  0x16   : > { %p939_p5 = scmp.lt.u32.totalorder %s932_s6, %s1484_s2 }
  0x17   : > { %p934_p13 = pneg %p1188_p11 }
  0x19   : > { %p935_p0 = pnand %p934_p13, %p933_p12 }
  0x1b   : > { %p936_p3 = pneg %p935_p0 }
  0x1d   : > { %p941_p7 = pnand %p939_p5, %p936_p3 }
  0x1f   : > { %944 = shalt.err (!%p941_p7)
}
  0x20   : > { %s945_s11 = scalar_lea.vmem %s1181_s25, 512  ;;  %p953_p2 = scmp.lt.s32.totalorder %s1181_s25, %s1181_s25 }
  0x21   : > { %p946_p9 = scmp.ne.s32.totalorder %s1181_s25, %s945_s11  ;;  %p954_p6 = scmp.lt.s32.totalorder %s945_s11, %s945_s11 }
  0x23   : > { %p948_p10 = pnand %p946_p9, %p934_p13  ;;  %p955_p4 = por %p954_p6, %p953_p2 }
  0x25   : > { %p949_p1 = pneg %p948_p10 }
  0x27   : > { %p956_p8 = pnand %p955_p4, %p949_p1 }
  0x29   : > { %959 = shalt.err (!%p956_p8)
}
  0x2a   : > { %s1097_s12 = smov 128   ;;  %s1098_s13 = smov 8  }
  0x2b   : > { %867 = dma.hbm_to_vmem [thread:$0]  (!%p1188_p11), %s1484_s2, 512, %s1181_s25, [#allocation6], %s1097_s12, %s1097_s12, %s1098_s13  }
  0x2c   : > { %p28_p1 = scmp.eq.s32.totalorder %s27_s29, 0  ;;  %p37_p2 = scmp.ne.s32.totalorder %s1090_s17, %s1086_s16 }
  0x2d   : > { %p38_p4 = scmp.eq.s32.totalorder %s1094_s18, 0  ;;  %p880_p6 = scmp.lt.s32.totalorder %s1094_s18, 2 }
  0x2e   : > { %s1224_s24 = scalar_select %p28_p1, %s1090_s17, %s30_s28  }
  0x2f   : > { %p39_p8 = por %p38_p4, %p37_p2  ;;  %p1495_p10 = scmp.eq.s32.totalorder %s1158_s19, 1 }
  0x30   : > { %s177_s5 = sand.u32 1, %s1090_s17   ;;  %s829_s6 = sshll.u32 %s1094_s18, 10 }
  0x31   : > { %p1228_p12 = por %p1495_p10, %p37_p2  ;;  %s1234_s7 = sshll.u32 %s177_s5, 6 }
  0x32   : > { %s1497_s0 = sld [smem:[#allocation13_spill]]  ;;  %s181_s28 = scalar_lea.vmem [#allocation2], %s1234_s7 }
  0x33   : > { %s188_s29 = sshll.u32 %s181_s28, 4  ;;  %p1244_p11 = pnand %p880_p6, %p39_p8  ;;  %s1248_s29 = int_to_ptr.vmem [resolvable:$true] %s188_s29 }
  0x34   : > { %s1250_s10 = scalar_lea.sflag [#allocation3], %s177_s5 }
  0x35   : > { %p962_p0 = pneg %p1244_p11 }
  0x38   : > { %s1241_s25 = scalar_lea.hbm %s1497_s0, %s829_s6  ;;  %s965_s14 = scalar_lea.hbm %s1497_s0, 2048 }
  0x39   : > { %s960_s11 = scalar_lea.hbm %s1241_s25, 1024  ;;  %p966_p7 = scmp.lt.u32.totalorder %s1241_s25, %s1497_s0 }
  0x3a   : > { %p961_p13 = scmp.ne.s32.totalorder %s1241_s25, %s960_s11  ;;  %p967_p9 = scmp.lt.u32.totalorder %s965_s14, %s960_s11 }
  0x3b   : > { %p969_p2 = scmp.lt.u32.totalorder %s960_s11, %s1241_s25 }
  0x3c   : > { %p963_p3 = pnand %p962_p0, %p961_p13  ;;  %p968_p1 = por %p967_p9, %p966_p7 }
  0x3e   : > { %p964_p5 = pneg %p963_p3  ;;  %p970_p4 = por %p969_p2, %p968_p1 }
  0x40   : > { %p971_p6 = pnand %p970_p4, %p964_p5 }
  0x42   : > { %974 = shalt.err (!%p971_p6)
}
  0x43   : > { %s975_s5 = scalar_lea.vmem %s1248_s29, 1024  ;;  %s1099_s8 = smov [#allocation2]  }
  0x44   : > { %p976_p8 = scmp.ne.s32.totalorder %s1248_s29, %s975_s5  ;;  %s980_s28 = sshll.u32 %s1099_s8, 4  ;;  %s981_s28 = int_to_ptr.vmem [resolvable:$false] %s980_s28 }
  0x45   : > { %s982_s12 = scalar_lea.vmem %s981_s28, 2048  ;;  %p983_p3 = scmp.lt.s32.totalorder %s1248_s29, %s981_s28 }
  0x46   : > { %p978_p10 = pnand %p976_p8, %p962_p0  ;;  %p984_p7 = scmp.lt.s32.totalorder %s982_s12, %s975_s5 }
  0x48   : > { %p979_p13 = pneg %p978_p10  ;;  %p985_p9 = por %p984_p7, %p983_p3 }
  0x4a   : > { %p986_p1 = pnand %p985_p9, %p979_p13 }
  0x4c   : > { %989 = shalt.err (!%p986_p1)
}
  0x4d   : > { %s1100_s11 = smov 256   ;;  %s1101_s13 = smov 16  }
  0x4e   : > { %871 = dma.hbm_to_vmem [thread:$0]  (!%p1244_p11), %s1241_s25, 1024, %s1248_s29, %s1250_s10, %s1100_s11, %s1100_s11, %s1101_s13  }
  0x4f   : > { %s1286_s26 = scalar_lea.hbm %s1483_s1, %s829_s6  ;;  %s202_s5 = scalar_lea.vmem [#allocation5], %s1234_s7 }
  0x50   : > { %s209_s8 = sshll.u32 %s202_s5, 4  ;;  %s198_s28 = sand.u32 1, %s1094_s18   ;;  %s1290_s8 = int_to_ptr.vmem [resolvable:$true] %s209_s8 }
  0x51   : > { %s1292_s12 = scalar_lea.sflag [#allocation6], %s198_s28  ;;  %s990_s0 = scalar_lea.hbm %s1286_s26, 1024 }
  0x52   : > { %p991_p5 = scmp.ne.s32.totalorder %s1286_s26, %s990_s0  ;;  %s995_s29 = scalar_lea.hbm %s1483_s1, 2048 }
  0x53   : > { %p996_p6 = scmp.lt.u32.totalorder %s1286_s26, %s1483_s1  ;;  %p997_p8 = scmp.lt.u32.totalorder %s995_s29, %s990_s0 }
  0x54   : > { %p993_p2 = pnand %p991_p5, %p962_p0  ;;  %p999_p13 = scmp.lt.u32.totalorder %s990_s0, %s1286_s26 }
  0x55   : > { %p998_p10 = por %p997_p8, %p996_p6 }
  0x56   : > { %p994_p4 = pneg %p993_p2 }
  0x57   : > { %p1000_p3 = por %p999_p13, %p998_p10 }
  0x59   : > { %p1001_p7 = pnand %p1000_p3, %p994_p4 }
  0x5b   : > { %1004 = shalt.err (!%p1001_p7)
}
  0x5c   : > { %s1005_s7 = scalar_lea.vmem %s1290_s8, 1024  ;;  %s1102_s20 = smov [#allocation5]  }
  0x5d   : > { %p1006_p9 = scmp.ne.s32.totalorder %s1290_s8, %s1005_s7  ;;  %s1010_s5 = sshll.u32 %s1102_s20, 4  ;;  %s1011_s5 = int_to_ptr.vmem [resolvable:$false] %s1010_s5 }
  0x5e   : > { %s1012_s28 = scalar_lea.vmem %s1011_s5, 2048  ;;  %p1013_p2 = scmp.lt.s32.totalorder %s1290_s8, %s1011_s5 }
  0x5f   : > { %p1008_p1 = pnand %p1006_p9, %p962_p0  ;;  %p1014_p6 = scmp.lt.s32.totalorder %s1012_s28, %s1005_s7 }
  0x61   : > { %p1009_p5 = pneg %p1008_p1  ;;  %p1015_p8 = por %p1014_p6, %p1013_p2 }
  0x63   : > { %p1016_p10 = pnand %p1015_p8, %p1009_p5 }
  0x65   : > { %1019 = shalt.err (!%p1016_p10)
}
  0x66   : > { %874 = dma.hbm_to_vmem [thread:$0]  (!%p1244_p11), %s1286_s26, 1024, %s1290_s8, %s1292_s12, %s1100_s11, %s1100_s11, %s1101_s13  }
  0x67   : > { %p1499_p0 = scmp.ne.s32.totalorder %s1493_s23, 0 }
  0x68   : > { %s1324_s0 = sand.u32 (!%p1499_p0), 1, %s1086_s16   ;;  %p1500_p4 = scmp.ne.s32.totalorder (!%p1499_p0), %s1491_s21, 0 }
  0x69   : > { %221 = sbr.rel (%p1499_p0) target bundleno = 639 (0x27f), region = 36  ;;  %s1327_s25 = sshll.u32 (!%p1499_p0), %s1324_s0, 6 }
  0x6a   : > { %s224_s9 = scalar_lea.sflag (!%p1499_p0), [#allocation3], %s1324_s0  ;;  %s1331_s6 = scalar_lea.vmem (!%p1499_p0), [#allocation2], %s1327_s25 }
  0x70   : > { %1065 = dma.done.wait (%p1500_p4), %s224_s9, 1024  }
  0x71   : > { %1067 = vsyncadd (%p1500_p4), %s224_s9, 4294966272  ;;  %s232_s23 = sand.u32 1, %s1158_s19   ;;  %s236_s13 = scalar_lea.vmem [#allocation5], %s1327_s25 }
  0x72   : > { %s233_s11 = scalar_lea.sflag [#allocation6], %s232_s23 }
  0x73   : > { %1069 = dma.done.wait (%p1500_p4), %s233_s11, 1024  }
  0x74   : > { %1071 = vsyncadd (%p1500_p4), %s233_s11, 4294966272  ;;  %p1501_p11 = scmp.eq.s32.totalorder %s1158_s19, 0 }
  0x76   : > { %1073 = dma.done.wait (%p1501_p11), [#allocation6], 512   ;;  %p1502_p13 = pmov %p1501_p11 }
  0x77   : > { %v491_v0 = vld [vmem:[%s236_s13 + $0x20] sm:$0xff]  ;;  %v492_v1 = vld [vmem:[%s236_s13 + $0x28] sm:$0xff]  ;;  %v493_v5 = vld [vmem:[%s236_s13 + $0x30] sm:$0xff]  ;;  %v1103_v39 = vmov 0.0|0.0   ;;  %v1104_v43 = vmov 0   ;;  %vm1105_vm0 = vmmov 0   ;;  %v326_v45 = vlaneseq }
  0x78   : > { %1075 = vsyncadd (%p1502_p13), [#allocation6], 4294966784  ;;  %v487_v2 = vld [vmem:[%s236_s13] sm:$0xff]  ;;  %v501_v3 = vadd.f32 %v492_v1, %v491_v0  ;;  %v488_v4 = vld [vmem:[%s236_s13 + $0x8] sm:$0xff]  ;;  %848 = vmatprep.subr.bf16.mxu0 %v1103_v39  ;;  %929 = vset.pattern.permute.xlu1 %v1104_v43  ;;  %v1106_v44 = vmov 0.0   ;;  %vm529_vm1 = vcmask 130112  }
  0x79   : > { %v494_v6 = vld [vmem:[%s236_s13 + $0x38] sm:$0xff]  ;;  %v495_v7 = vadd.f32 %v488_v4, %v487_v2  ;;  %v489_v8 = vld [vmem:[%s236_s13 + $0x10] sm:$0xff]  ;;  %v1354_v14 = vld [vmem:[%s1331_s6] sm:$0xff]  ;;  %928 = vset.pattern.permute.xlu0 %v1104_v43  ;;  %845 = vmatprep.mubr.msk.f32.mxu0 %vm1105_vm0, %v1106_v44  ;;  %v327_v46 = vand.u32 127, %v326_v45  ;;  %v1395_v47 = vshrl.u32 %v326_v45, 7  ;;  %vm536_vm2 = vcmask 195712  }
  0x7a   : > { %v490_v9 = vld [vmem:[%s236_s13 + $0x18] sm:$0xff]  ;;  %502 = vadd.xlane.f32.xlu1 %v501_v3  ;;  %v504_v10 = vadd.f32 %v494_v6, %v493_v5  ;;  %v1348_v12 = vld [vmem:[%s1331_s6 + $0x10] sm:$0xff]  ;;  %v1357_v15 = vld [vmem:[%s1331_s6 + $0x8] sm:$0xff]  ;;  %v290_v26 = vmul.f32 %v1354_v14, %v1354_v14  ;;  %vm543_vm3 = vcmask 261312   ;;  %vm545_vm4 = vcmask 261120   ;;  %s269_s8 = scalar_lea.vmem [#allocation8], %s1327_s25 }
  0x7b   : > { %496 = vadd.xlane.f32.xlu0 %v495_v7  ;;  %v498_v11 = vadd.f32 %v490_v9, %v489_v8  ;;  %v1351_v13 = vld [vmem:[%s1331_s6 + $0x18] sm:$0xff]  ;;  %v278_v17 = vadd.f32 %v1357_v15, %v1354_v14  ;;  %v1364_v18 = vld [vmem:[%s1331_s6 + $0x30] sm:$0xff]  ;;  %v1370_v20 = vld [vmem:[%s1331_s6 + $0x20] sm:$0xff]  ;;  %v292_v23 = vmul.f32 %v1348_v12, %v1348_v12  ;;  %v291_v27 = vmul.f32 %v1357_v15, %v1357_v15  ;;  %s703_s12 = sshll.u32 %s269_s8, 4  ;;  %s831_s29 = sshll.u32 %s1158_s19, 10  ;;  %s1431_s12 = int_to_ptr.vmem [resolvable:$true] %s703_s12 }
  0x7c   : > { %v281_v16 = vadd.f32 %v1351_v13, %v1348_v12  ;;  %v1367_v19 = vld [vmem:[%s1331_s6 + $0x38] sm:$0xff]  ;;  %v1373_v21 = vld [vmem:[%s1331_s6 + $0x28] sm:$0xff]  ;;  %v293_v24 = vmul.f32 %v1351_v13, %v1351_v13  ;;  %v296_v29 = vmul.f32 %v1364_v18, %v1364_v18  ;;  %v294_v32 = vmul.f32 %v1370_v20, %v1370_v20  ;;  %v511_v35 = vld [vmem:[#allocation7] sm:$0xff]  ;;  %s1438_s14 = scalar_lea.hbm %s1486_s4, %s831_s29  ;;  %s690_s7 = scalar_lea.sflag [#allocation4], %s1324_s0 }
  0x7d   : > { %v287_v22 = vadd.f32 %v1367_v19, %v1364_v18  ;;  %v284_v25 = vadd.f32 %v1373_v21, %v1370_v20  ;;  %v297_v30 = vmul.f32 %v1367_v19, %v1367_v19  ;;  %v298_v31 = vadd.f32 %v291_v27, %v290_v26  ;;  %v512_v36 = vld [vmem:[#allocation7 + $0x8] sm:$0xff]  ;;  %v513_v40 = vld [vmem:[#allocation7 + $0x10] sm:$0xff]  ;;  %v514_v41 = vld [vmem:[#allocation7 + $0x18] sm:$0xff]  ;;  %s1020_s20 = scalar_lea.vmem %s1431_s12, 1024  ;;  %s1109_s5 = smov [#allocation8]  }
  0x7e   : > { %505 = vadd.xlane.f32.xlu1 %v504_v10  ;;  %v301_v28 = vadd.f32 %v293_v24, %v292_v23  ;;  %v295_v33 = vmul.f32 %v1373_v21, %v1373_v21  ;;  %v849_v38 = vpack.c.bf16 %v512_v36, %v511_v35  ;;  %v852_v42 = vpack.c.bf16 %v514_v41, %v513_v40  ;;  %p1021_p3 = scmp.ne.s32.totalorder %s1431_s12, %s1020_s20  ;;  %s1024_s28 = sshll.u32 %s1109_s5, 4  ;;  %s1025_s28 = int_to_ptr.vmem [resolvable:$false] %s1024_s28 }
  0x7f   : > { %499 = vadd.xlane.f32.xlu0 %v498_v11  ;;  %v307_v34 = vadd.f32 %v297_v30, %v296_v29  ;;  %v538_v49 = vadd.s32 4294967272, %v327_v46  ;;  %v524_v50 = vadd.s32 4294967288, %v327_v46  ;;  %v531_v51 = vadd.s32 4294967280, %v327_v46  ;;  %s1026_s25 = scalar_lea.vmem %s1025_s28, 2048  ;;  %p1027_p1 = scmp.lt.s32.totalorder %s1431_s12, %s1025_s28 }
  0x80   : > { %v304_v37 = vadd.f32 %v295_v33, %v294_v32  ;;  %850 = vmatpush3.bf16.msra.mxu0 %v849_v38  ;;  %v1398_v53 = vsub.s32 %v327_v46, %v1395_v47  ;;  %v1107_v23 = vmov 1983009808   ;;  %v1108_v30 = vmov 1934713408   ;;  %p1022_p7 = pnand %p1021_p3, %p1228_p12  ;;  %p1028_p5 = scmp.lt.s32.totalorder %s1026_s25, %s1020_s20 }
  0x81   : > { %851 = vmatprep.subr.bf16.mxu0 %v1103_v39  ;;  %v541_v55 = vsub.s32 %v538_v49, %v1395_v47  ;;  %v527_v57 = vsub.s32 %v524_v50, %v1395_v47  ;;  %v534_v58 = vsub.s32 %v531_v51, %v1395_v47  ;;  %v350_v24 = vunpack.c.l.s4 %v1107_v23 }
  0x82   : > { %282 = vadd.xlane.f32.xlu1 %v281_v16  ;;  %vm372_vm5 = vcmask 60416   ;;  %p1023_p9 = pneg %p1022_p7  ;;  %p1029_p2 = por %p1028_p5, %p1027_p1 }
  0x83   : > { %279 = vadd.xlane.f32.xlu0 %v278_v17  ;;  %v351_v26 = vunpack.c.0.s8 %v350_v24  ;;  %v456_v24 = vsub.s32 2, %v1395_v47 }
  0x84   : > { %853 = vmatpush3.bf16.msra.mxu0 %v852_v42  ;;  %p1030_p6 = pnand %p1029_p2, %p1023_p9 }
  0x85   : > { %v354_v33 = vsub.s32 %v351_v26, %v1395_v47 }
  0x86   : > { %288 = vadd.xlane.f32.xlu1 %v287_v22 }
  0x87   : > { %285 = vadd.xlane.f32.xlu0 %v284_v25 }
  0x8a   : > { %302 = vadd.xlane.f32.xlu1 %v301_v28 }
  0x8b   : > { %299 = vadd.xlane.f32.xlu0 %v298_v31  ;;  %v366_v31 = vunpack.c.l.s4 %v1108_v30 }
  0x8e   : > { %308 = vadd.xlane.f32.xlu1 %v307_v34 }
  0x8f   : > { %305 = vadd.xlane.f32.xlu0 %v304_v37  ;;  %v367_v37 = vunpack.c.0.s8 %v366_v31 }
  0x91   : > { %v370_v42 = vsub.s32 %v367_v37, %v1395_v47 }
 0x107   : > { %v503_v48 = vpop.xlane.xlu1 %502 }
 0x108   : > { %v497_v52 = vpop.xlane.xlu0 %496  ;;  %v509_v59 = vmul.f32 0.00390625, %v503_v48 }
 0x109   : > { %v507_v54 = vmul.f32 0.00390625, %v497_v52 }
 0x10a   : > { %v535_v3 = vrot.slane %v509_v59, %v534_v58 }
 0x10b   : > { %v506_v56 = vpop.xlane.xlu1 %505  ;;  %v523_v63 = vrot.slane %v507_v54, %v1398_v53 }
 0x10c   : > { %v510_v60 = vmul.f32 0.00390625, %v506_v56  ;;  %v500_v61 = vpop.xlane.xlu0 %499 }
 0x10d   : > { %v508_v62 = vmul.f32 0.00390625, %v500_v61 }
 0x10e   : > { %v542_v0 = vrot.slane %v510_v60, %v541_v55 }
 0x10f   : > { %v528_v1 = vrot.slane %v508_v62, %v527_v57  ;;  %v283_v2 = vpop.xlane.xlu1 %282  ;;  %v515_v62 = vld [vmem:[%s1485_s3] sm:$0x1] }
 0x110   : > { %v280_v4 = vpop.xlane.xlu0 %279  ;;  %318 = vperm.xlu1 %929, %v283_v2  }
 0x111   : > { %v530_v5 = vsel %vm529_vm1, %v528_v1, %v523_v63  ;;  %315 = vperm.xlu0 %928, %v280_v4   ;;  %v448_v63 = vsub.s32 0, %v1395_v47 }
 0x112   : > { %v537_v6 = vsel %vm536_vm2, %v535_v3, %v530_v5 }
 0x113   : > { %v544_v7 = vsel %vm543_vm3, %v542_v0, %v537_v6  ;;  %v289_v9 = vpop.xlane.xlu1 %288 }
 0x114   : > { %846 = vmatmul.mubr.msk.f32.vlgmr.msra.gmra.mrb[0].mxu0 %vm545_vm4, %v544_v7  ;;  %v286_v8 = vpop.xlane.xlu0 %285 }
 0x115   : > { %321 = vperm.xlu1 %929, %v286_v8  }
 0x117   : > { %v303_v11 = vpop.xlane.xlu1 %302 }
 0x118   : > { %v300_v10 = vpop.xlane.xlu0 %299 }
 0x119   : > { %324 = vperm.xlu1 %929, %v289_v9  }
 0x11b   : > { %v309_v17 = vpop.xlane.xlu1 %308 }
 0x11c   : > { %v306_v16 = vpop.xlane.xlu0 %305 }
 0x11d   : > { %381 = vperm.xlu1 %929, %v300_v10  }
 0x121   : > { %384 = vperm.xlu1 %929, %v303_v11   ;;  %v452_v11 = vsub.s32 1, %v1395_v47 }
 0x125   : > { %387 = vperm.xlu1 %929, %v306_v16  }
 0x129   : > { %390 = vperm.xlu1 %929, %v309_v17  }
 0x18f   : > { %v319_v22 = vpop.permute.xlu1 %318 }
 0x190   : > { %v316_v25 = vpop.permute.xlu0 %315  ;;  %v335_v32 = vrot.slane %v319_v22, %v1398_v53 }
 0x191   : > { %v331_v27 = vrot.slane %v316_v25, %v1398_v53  ;;  %v460_v25 = vsub.s32 3, %v1395_v47 }
 0x194   : > { %v322_v28 = vpop.permute.xlu1 %321 }
 0x195   : > { %v339_v29 = vrot.slane %v322_v28, %v1398_v53 }
 0x197   : > { %v348_v34 = vcombine.low %v331_v27, %v339_v29 }
 0x198   : > { %v325_v35 = vpop.permute.xlu1 %324 }
 0x199   : > { %v343_v36 = vrot.slane %v325_v35, %v1398_v53  ;;  %v355_v39 = vrot.slane %v348_v34, %v354_v33 }
 0x19b   : > { %v356_v38 = vcombine.low %v335_v32, %v343_v36 }
 0x19c   : > { %v382_v40 = vpop.permute.xlu1 %381 }
 0x19d   : > { %v363_v41 = vrot.slane %v356_v38, %v354_v33  ;;  %v395_v50 = vrot.slane %v382_v40, %v1398_v53 }
 0x19f   : > { %v364_v43 = vcombine.low %v355_v39, %v363_v41 }
 0x1a0   : > { %v385_v44 = vpop.permute.xlu1 %384 }
 0x1a1   : > { %v371_v45 = vrot.slane %v364_v43, %v370_v42  ;;  %v399_v52 = vrot.slane %v385_v44, %v1398_v53 }
 0x1a3   : > { %v373_v46 = vsel %vm372_vm5, %v371_v45, 0.0 }
 0x1a4   : > { %v388_v48 = vpop.permute.xlu1 %387  ;;  %374 = vadd.xlane.f32.xlu1 %v373_v46 }
 0x1a5   : > { %v403_v49 = vrot.slane %v388_v48, %v1398_v53 }
 0x1a7   : > { %v412_v54 = vcombine.low %v395_v50, %v403_v49 }
 0x1a8   : > { %v391_v51 = vpop.permute.xlu1 %390 }
 0x1a9   : > { %v407_v55 = vrot.slane %v391_v51, %v1398_v53  ;;  %v419_v57 = vrot.slane %v412_v54, %v354_v33 }
 0x1ab   : > { %v420_v56 = vcombine.low %v399_v52, %v407_v55 }
 0x1ad   : > { %v427_v58 = vrot.slane %v420_v56, %v354_v33 }
 0x1af   : > { %v428_v59 = vcombine.low %v419_v57, %v427_v58 }
 0x1b1   : > { %v435_v60 = vrot.slane %v428_v59, %v370_v42 }
 0x1b3   : > { %v436_v61 = vsel %vm372_vm5, %v435_v60, 0.0 }
 0x1b4   : > { %437 = vadd.xlane.f32.xlu0 %v436_v61 }
 0x1e7   : > { %v614_v0 = vpop.f32.mrb[0].mxu0 }
 0x1e8   : > { %v615_v1 = vadd.f32 %v614_v0, %v515_v62  ;;  %v847_v2 = vpop.f32.mrb[1].mxu0 }
 0x1ea   : > { %v621_v3 = vrot.slane %v615_v1, %v448_v63 }
 0x1ec   : > { %623 = vbcast.lane.b32.xlu0 %v621_v3, 256  ;;  %627 = vbcast.lane.b32.xlu1 %v621_v3, 264 }
 0x1f0   : > { %635 = vbcast.lane.b32.xlu0 %v621_v3, 280  ;;  %631 = vbcast.lane.b32.xlu1 %v621_v3, 272 }
 0x1f4   : > { %643 = vbcast.lane.b32.xlu0 %v621_v3, 296  ;;  %639 = vbcast.lane.b32.xlu1 %v621_v3, 288 }
 0x1f8   : > { %651 = vbcast.lane.b32.xlu0 %v621_v3, 312  ;;  %647 = vbcast.lane.b32.xlu1 %v621_v3, 304 }
 0x231   : > { %v375_v53 = vpop.xlane.xlu1 %374 }
 0x232   : > { %v439_v4 = vmul.f32 0.00048828125, %v375_v53 }
 0x234   : > { %v440_v6 = vmul.f32 %v439_v4, %v375_v53  ;;  %v449_v32 = vrot.slane %v439_v4, %v448_v63  ;;  %v453_v33 = vrot.slane %v439_v4, %v452_v11  ;;  %v457_v41 = vrot.slane %v439_v4, %v456_v24 }
 0x235   : > { %v461_v42 = vrot.slane %v439_v4, %v460_v25 }
 0x241   : > { %v438_v5 = vpop.xlane.xlu0 %437 }
 0x242   : > { %v441_v7 = vsub.f32 %v438_v5, %v440_v6 }
 0x244   : > { %v442_v8 = vmul.f32 0.0004885198, %v441_v7 }
 0x246   : > { %v443_v9 = vadd.f32 1e-05, %v442_v8 }
 0x248   : > { %930 = vrsqrt.f32 %v443_v9 }
 0x252   : > { %v931_v10 = vpop.eup %930 }
 0x253   : > { %v474_v22 = vrot.slane %v931_v10, %v452_v11  ;;  %v470_v23 = vrot.slane %v931_v10, %v448_v63  ;;  %v478_v29 = vrot.slane %v931_v10, %v456_v24  ;;  %v482_v30 = vrot.slane %v931_v10, %v460_v25 }
 0x25e   : > { %v628_v16 = vpop.permute.xlu1 %627  ;;  %v624_v17 = vpop.permute.xlu0 %623 }
 0x25f   : > { %v654_v26 = vmul.f32 %v628_v16, %v474_v22  ;;  %v653_v27 = vmul.f32 %v624_v17, %v470_v23 }
 0x261   : > { %v657_v36 = vmul.f32 %v653_v27, %v449_v32  ;;  %v658_v37 = vmul.f32 %v654_v26, %v453_v33  ;;  %v665_v39 = vmul.f32 %v653_v27, %v1354_v14  ;;  %v666_v40 = vmul.f32 %v653_v27, %v1357_v15 }
 0x262   : > { %v632_v28 = vpop.permute.xlu1 %631  ;;  %v636_v31 = vpop.permute.xlu0 %635  ;;  %v667_v44 = vmul.f32 %v654_v26, %v1348_v12  ;;  %v668_v45 = vmul.f32 %v654_v26, %v1351_v13 }
 0x263   : > { %v655_v34 = vmul.f32 %v632_v28, %v478_v29  ;;  %v656_v35 = vmul.f32 %v636_v31, %v482_v30 }
 0x265   : > { %v659_v48 = vmul.f32 %v655_v34, %v457_v41  ;;  %v660_v49 = vmul.f32 %v656_v35, %v461_v42  ;;  %v669_v54 = vmul.f32 %v655_v34, %v1370_v20  ;;  %v670_v55 = vmul.f32 %v655_v34, %v1373_v21 }
 0x266   : > { %v640_v38 = vpop.permute.xlu1 %639  ;;  %v644_v47 = vpop.permute.xlu0 %643  ;;  %v671_v13 = vmul.f32 %v656_v35, %v1364_v18  ;;  %v672_v57 = vmul.f32 %v656_v35, %v1367_v19 }
 0x267   : > { %v661_v43 = vsub.f32 %v640_v38, %v657_v36  ;;  %v662_v46 = vsub.f32 %v644_v47, %v658_v37 }
 0x269   : > { %v673_v50 = vadd.f32 %v665_v39, %v661_v43  ;;  %v674_v51 = vadd.f32 %v666_v40, %v661_v43  ;;  %v675_v52 = vadd.f32 %v667_v44, %v662_v46  ;;  %v676_v14 = vadd.f32 %v668_v45, %v662_v46 }
 0x26a   : > { %v648_v15 = vpop.permute.xlu1 %647  ;;  %v652_v56 = vpop.permute.xlu0 %651 }
 0x26b   : > { %681 = vst [vmem:[%s269_s8] sm:$0xff] %v673_v50  ;;  %682 = vst [vmem:[%s269_s8 + $0x8] sm:$0xff] %v674_v51  ;;  %v663_v12 = vsub.f32 %v648_v15, %v659_v48  ;;  %v664_v58 = vsub.f32 %v652_v56, %v660_v49 }
 0x26c   : > { %683 = vst [vmem:[%s269_s8 + $0x10] sm:$0xff] %v675_v52  ;;  %684 = vst [vmem:[%s269_s8 + $0x18] sm:$0xff] %v676_v14 }
 0x26d   : > { %v677_v20 = vadd.f32 %v669_v54, %v663_v12  ;;  %v678_v21 = vadd.f32 %v670_v55, %v663_v12  ;;  %v679_v59 = vadd.f32 %v671_v13, %v664_v58  ;;  %v680_v60 = vadd.f32 %v672_v57, %v664_v58 }
 0x26f   : > { %685 = vst [vmem:[%s269_s8 + $0x20] sm:$0xff] %v677_v20  ;;  %686 = vst [vmem:[%s269_s8 + $0x28] sm:$0xff] %v678_v21 }
 0x270   : > { %687 = vst [vmem:[%s269_s8 + $0x30] sm:$0xff] %v679_v59  ;;  %688 = vst [vmem:[%s269_s8 + $0x38] sm:$0xff] %v680_v60 }
 0x271   : > { %1033 = shalt.err (!%p1030_p6)
}
 0x272   : > { %s1034_s9 = scalar_lea.hbm %s1438_s14, 1024  ;;  %s1038_s11 = scalar_lea.hbm %s1486_s4, 2048 }
 0x273   : > { %p1035_p8 = scmp.ne.s32.totalorder %s1438_s14, %s1034_s9  ;;  %p1039_p4 = scmp.lt.u32.totalorder %s1438_s14, %s1486_s4 }
 0x274   : > { %p1040_p11 = scmp.lt.u32.totalorder %s1038_s11, %s1034_s9  ;;  %p1042_p3 = scmp.lt.u32.totalorder %s1034_s9, %s1438_s14 }
 0x275   : > { %p1036_p10 = pnand %p1035_p8, %p1228_p12 }
 0x276   : > { %p1041_p13 = por %p1040_p11, %p1039_p4 }
 0x277   : > { %p1037_p0 = pneg %p1036_p10 }
 0x278   : > { %p1043_p7 = por %p1042_p3, %p1041_p13 }
 0x27a   : > { %p1044_p9 = pnand %p1043_p7, %p1037_p0 }
 0x27c   : > { %1047 = shalt.err (!%p1044_p9)
}
 0x27d   : > { %s1110_s26 = smov 256   ;;  %s1111_s8 = smov 16  }
 0x27e   : > { %862 = dma.vmem_to_hbm [thread:$0]  (%p1228_p12), %s1431_s12, 1024, %s1438_s14, %s690_s7, %s1110_s26, %s1110_s26, %s1111_s8  }
 0x27f PF: > { %s718_s29 = sand.u32 1, %s1082_s15   ;;  %p1503_p1 = scmp.ne.s32.totalorder %s1492_s22, 0 }
 0x280   : > { %p1504_p5 = scmp.ge.s32.totalorder %s1094_s18, 2  ;;  %s719_s19 = scalar_lea.sflag [#allocation4], %s718_s29 }
 0x282   : > { %p876_p2 = pnand %p1504_p5, %p1503_p1 }
 0x284   : > { %1077 = dma.done.wait (!%p876_p2), %s719_s19, 1024  }
 0x285   : > { %1079 = vsyncadd (!%p876_p2), %s719_s19, 4294966272  ;;  %p20_p6 = scmp.ge.s32.totalorder %s1193_s27, 4   ;;  %s1505_s15 = smov %s1086_s16 }
 0x286   : > { %s1506_s16 = smov %s1090_s17  ;;  %s1507_s17 = smov %s1224_s24 }
 0x287   : > { %s1508_s18 = smov %s1193_s27  ;;  %22 = sbr.rel (!%p20_p6) target bundleno = 9 (0x9), region = 98 }
 0x28e   :  { %724 = vsyncpa [#allocation3], 1 }
 0x28f   :  { %726 = vsyncpa [#allocation3 + $0x1], 1 }
 0x290   :  { %727 = vsyncpa [#allocation6], 1 }
 0x291   :  { %729 = vsyncpa [#allocation6 + $0x1], 1 }
 0x292   :  { %730 = vsyncpa [#allocation4], 1 }
 0x293   :  { %732 = vsyncpa [#allocation4 + $0x1], 1 }

</bundles_post_ra>
